<compile_context>
chip_gen: v7x
topology: tpu7x:2x2x1
jax: 0.10.0
libtpu: 0.0.40
codegen_flags: <defaults>
</compile_context>

<pallas_src>
import jax
import jax.numpy as jnp
from jax import lax
from jax.experimental import pallas as pl
from jax.experimental.pallas import tpu as pltpu


def _round_up(x, m):
    return (x + m - 1) // m * m


def _vmem_capacity_bytes():
    try:
        return int(pltpu.get_tpu_info().vmem_capacity_bytes)
    except Exception:
        return 64 << 20  # conservative fallback (v7x per-core VMEM)


def prepare_lm_head_weight(embedding_weight):
    """One-time prep: cast the tied (V, E) embedding matrix to bf16.

    Call this ONCE outside the per-step decode/prefill loop; for real GPT-2 the
    cast is a full HBM read+write of a 77-161 MB matrix and must not be paid on
    every forward call.
    """
    return embedding_weight.astype(jnp.bfloat16)


def _lm_head_kernel(h_ref, w_ref, o_ref):
    """One (tm, tn) logits tile: o = h @ w.T with f32 MXU accumulation.

    h_ref: (tm, E) bf16 activations
    w_ref: (tn, E) bf16 embedding rows (native (V, E) layout; the contraction
           dims give the transpose for free on the MXU)
    o_ref: (tm, tn) output block.  Full-E contraction per step -> write direct.
    """
    o_ref[...] = lax.dot_general(
        h_ref[...],
        w_ref[...],
        dimension_numbers=(((1,), (1,)), ((), ())),
        preferred_element_type=jnp.float32,
    ).astype(o_ref.dtype)


def gpt2_lm_head(hidden_state, embedding_weight, *, tm=None, tn=None,
                 logits_dtype=jnp.float32):
    """GPT2LMHead forward.

    hidden_state:     (B, S, E) float array.
    embedding_weight: (V, E) tied embedding matrix (NOT transposed).  Pass the
                      result of prepare_lm_head_weight() to avoid a per-call
                      bf16 cast of the full embedding.
    Returns lm_logits: (B, S, V), identical to nn.Linear(E, V, bias=False)
    with weight = embedding_weight (bf16 inputs, f32 accumulation).
    """
    B, S, E = hidden_state.shape
    V, E2 = embedding_weight.shape
    assert E == E2
    M = B * S

    w = embedding_weight
    if w.dtype != jnp.bfloat16:
        # Prefer prepare_lm_head_weight() outside the step loop.
        w = w.astype(jnp.bfloat16)
    h2d = hidden_state.reshape(M, E).astype(jnp.bfloat16)

    out_bytes = jnp.dtype(logits_dtype).itemsize

    # --- tile selection sized against the real per-core VMEM capacity --------
    vmem_cap = _vmem_capacity_bytes()
    budget = int(vmem_cap * 0.6)          # working-set budget, leaves headroom

    if tm is None:
        tm = min(256, _round_up(M, 8))
    if tn is None:
        # Largest lane-dense vocab tile whose double-buffered working set
        # (2 x bf16 activation tile + 2 x bf16 weight tile + 2 x output tile)
        # fits the budget.  ~4096 on v7x (E=1600), up to 8192 on v5e/v6e.
        per_tn = 2 * E * 2 + 2 * tm * out_bytes
        fixed = 2 * tm * E * 2
        tn_fit = max(128, (budget - fixed) // per_tn)
        if tn_fit >= 256:
            tn_fit = (tn_fit // 256) * 256   # multiple of the 256-wide MXU
        else:
            tn_fit = 128
        tn = min(tn_fit, 8192, _round_up(V, 128))
    assert tm % 8 == 0, "tm must be a multiple of 8 (sublane)"
    assert tn % 128 == 0, "tn must be a multiple of 128 (lane)"

    # Vocab axis outermost: weight block index constant across the inner M
    # loop (streamed once), and megacore shards the weight across cores.
    grid = (pl.cdiv(V, tn), pl.cdiv(M, tm))

    tile_bytes = 2 * (tm * E * 2) + 2 * (tn * E * 2) + 2 * (tm * tn * out_bytes)
    vmem_limit = max(32 << 20,
                     min(tile_bytes + (12 << 20), int(vmem_cap * 0.92)))

    cost = pl.CostEstimate(
        flops=2 * M * E * V,
        transcendentals=0,
        bytes_accessed=M * E * 2 + V * E * 2 + M * V * out_bytes,
    )

    # TODO(synk): on v7x decode (M tiny), weight-DMA latency can be further
    # hidden with pipeline_mode=pl.Buffered(3) on the weight BlockSpec if the
    # chosen tn leaves VMEM headroom; left at the default double-buffering.
    out = pl.pallas_call(
        _lm_head_kernel,
        out_shape=jax.ShapeDtypeStruct((M, V), logits_dtype),
        grid_spec=pltpu.PrefetchScalarGridSpec(
            num_scalar_prefetch=0,
            grid=grid,
            in_specs=[
                pl.BlockSpec((tm, E), lambda j, i: (i, 0)),   # activations
                pl.BlockSpec((tn, E), lambda j, i: (j, 0)),   # embedding rows
            ],
            out_specs=pl.BlockSpec((tm, tn), lambda j, i: (i, j)),
        ),
        compiler_params=pltpu.CompilerParams(
            dimension_semantics=("parallel", "arbitrary"),
            vmem_limit_bytes=vmem_limit,
        ),
        cost_estimate=cost,
    )(h2d, w)

    return out.reshape(B, S, V)


if __name__ == "__main__":
    # Small, deterministic synthetic setup consistent with the module:
    #   n_embd = 32, vocab_size = 256, batch = 2, seq = 8.
    key = jax.random.PRNGKey(0)
    k_w, k_h = jax.random.split(key)

    batch, seq, n_embd, vocab = 2, 8, 32, 256

    # model_embeddings_weights: shape (vocab_size, n_embd)
    embedding_weight = (
        jax.random.normal(k_w, (vocab, n_embd), dtype=jnp.float32) * 0.02
    )
    hidden_state = jax.random.normal(k_h, (batch, seq, n_embd), dtype=jnp.float32)

    # One-time weight prep (outside any per-step loop), then the forward call.
    w_bf16 = prepare_lm_head_weight(embedding_weight)
    lm_logits = gpt2_lm_head(hidden_state, w_bf16)
    jax.block_until_ready(lm_logits)

    assert lm_logits.shape == (batch, seq, vocab)
    assert lm_logits.dtype == jnp.float32

    # Reference 1: same bf16 input rounding, f32 math (tight tolerance).
    h_bf = hidden_state.astype(jnp.bfloat16).astype(jnp.float32)
    w_bf = embedding_weight.astype(jnp.bfloat16).astype(jnp.float32)
    ref_bf16 = jnp.einsum("bse,ve->bsv", h_bf, w_bf)
    assert jnp.allclose(lm_logits, ref_bf16, atol=2e-3, rtol=2e-3)

    # Reference 2: full f32 math (loose tolerance covering bf16 input rounding).
    ref_f32 = jnp.einsum("bse,ve->bsv", hidden_state, embedding_weight)
    assert jnp.allclose(lm_logits, ref_f32, atol=2e-2, rtol=2e-2)

    print("KERNEL_OK")
</pallas_src>

<mosaic_0001>
module attributes {stable_mosaic.version = 11 : i64} {
  func.func @_lm_head_kernel(%arg0: i32, %arg1: i32, %arg2: memref<16x32xbf16, #tpu.memory_space<vmem>>, %arg3: memref<256x32xbf16, #tpu.memory_space<vmem>>, %arg4: memref<16x256xf32, #tpu.memory_space<vmem>>) attributes {dimension_semantics = [#tpu.dimension_semantics<parallel>, #tpu.dimension_semantics<arbitrary>], iteration_bounds = array<i64: 1, 1>, scalar_prefetch = 0 : i64, scratch_operands = 0 : i64, tpu.core_type = #tpu.core_type<tc>, window_params = [{transform_indices = @transform_0, window_bounds = array<i64: 16, 32>}, {transform_indices = @transform_1, window_bounds = array<i64: 256, 32>}, {transform_indices = @transform_2, window_bounds = array<i64: 16, 256>}]} {
    %c0 = arith.constant 0 : index
    %c0_0 = arith.constant 0 : index
    %0 = vector.load %arg2[%c0, %c0_0] : memref<16x32xbf16, #tpu.memory_space<vmem>>, vector<16x32xbf16>
    %c0_1 = arith.constant 0 : index
    %c0_2 = arith.constant 0 : index
    %1 = vector.load %arg3[%c0_1, %c0_2] : memref<256x32xbf16, #tpu.memory_space<vmem>>, vector<256x32xbf16>
    %cst = arith.constant dense<0.000000e+00> : vector<16x256xf32>
    %2 = tpu.matmul %0, %1, %cst {dimension_numbers = #tpu.dot_dimension_numbers<[1], [1], [0], [0], [0, 0, 1, 0], [], []>} : vector<16x32xbf16>, vector<256x32xbf16>, vector<16x256xf32> -> vector<16x256xf32>
    %c0_3 = arith.constant 0 : index
    %c0_4 = arith.constant 0 : index
    %3 = vector.load %arg4[%c0_3, %c0_4] : memref<16x256xf32, #tpu.memory_space<vmem>>, vector<16x256xf32>
    tpu.vector_store %arg4[%c0_3, %c0_4], %2 {strides = array<i32>} : memref<16x256xf32, #tpu.memory_space<vmem>>, vector<16x256xf32>,
    return
  }
  func.func @transform_0(%arg0: i32, %arg1: i32) -> (i32, i32) {
    %c0_i32 = arith.constant 0 : i32
    %c0_i32_0 = arith.constant 0 : i32
    return %arg1, %c0_i32 : i32, i32
  }
  func.func @transform_1(%arg0: i32, %arg1: i32) -> (i32, i32) {
    %c0_i32 = arith.constant 0 : i32
    %c0_i32_0 = arith.constant 0 : i32
    return %arg0, %c0_i32 : i32, i32
  }
  func.func @transform_2(%arg0: i32, %arg1: i32) -> (i32, i32) {
    %c0_i32 = arith.constant 0 : i32
    return %arg1, %arg0 : i32, i32
  }
}

</mosaic_0001>

<bundles_post_ra>
// kernel: tpu_custom_call.1
= control target key start
LH: loop header
LB: loop body
LE: loop exit
PB: predicated region body
PF: predicated region fallthrough
CT: control target
= control target key end

     0   :  { %vm132_vm0 = vcmask 261120   ;;  %s434_s0 = inlined_call_operand.vmem [shape: bf16[16,32], index: 0, kind: input, shape index: {}]   ;;  %s435_s1 = inlined_call_operand.vmem [shape: bf16[256,32], index: 1, kind: input, shape index: {}]   ;;  %s436_s2 = inlined_call_operand.hbm [shape: f32[16,256], index: 2, kind: output, shape index: {}]  }
   0x1   :  { %v294_v0 = vld [vmem:[%s435_s1 + $0x40] sm:$0xff]   ;;  %v296_v2 = vld [vmem:[%s435_s1 + $0x48] sm:$0xff]   ;;  %v298_v6 = vld [vmem:[%s435_s1 + $0x50] sm:$0xff]  }
   0x2   :  { %v295_v1 = vld [vmem:[%s435_s1] sm:$0xff]   ;;  %283 = vmatprep.subr.msk.bf16.mxu0 %vm132_vm0, %v294_v0  ;;  %v297_v4 = vld [vmem:[%s435_s1 + $0x8] sm:$0xff]   ;;  %v299_v7 = vld [vmem:[%s435_s1 + $0x10] sm:$0xff]  }
   0x3   :  { %v137_v3 = vsel %vm132_vm0, %v295_v1, 0  ;;  %v140_v5 = vsel %vm132_vm0, %v297_v4, 0  ;;  %v310_v8 = vld [vmem:[%s434_s0] sm:$0xff]   ;;  %v143_v9 = vsel %vm132_vm0, %v299_v7, 0  ;;  %v300_v10 = vld [vmem:[%s435_s1 + $0x58] sm:$0xff]  }
   0x4   :  { %266 = vmatpush3.bf16.xpose.msra.mxu0 %v137_v3 }
   0x5   :  { %284 = vmatprep.subr.msk.bf16.mxu0 %vm132_vm0, %v296_v2 }
   0xc   :  { %268 = vmatpush3.bf16.xpose.msra.mxu0 %v140_v5 }
   0xd   :  { %285 = vmatprep.subr.msk.bf16.mxu0 %vm132_vm0, %v298_v6 }
   0xe   :  { %7 = vsyncpa [#allocation3], 0  ;;  %281 = vmatprep.mubr.msk.bf16.mxu0 %vm132_vm0, %v310_v8  ;;  %v301_v11 = vld [vmem:[%s435_s1 + $0x18] sm:$0xff]   ;;  %v302_v13 = vld [vmem:[%s435_s1 + $0x60] sm:$0xff]   ;;  %s335_s14 = smov [#allocation2]  }
   0xf   :  { %v146_v12 = vsel %vm132_vm0, %v301_v11, 0  ;;  %v303_v14 = vld [vmem:[%s435_s1 + $0x20] sm:$0xff]   ;;  %v304_v16 = vld [vmem:[%s435_s1 + $0x68] sm:$0xff]   ;;  %v306_v19 = vld [vmem:[%s435_s1 + $0x70] sm:$0xff]   ;;  %s236_s15 = sshll.u32 %s335_s14, 4  ;;  %s237_s15 = int_to_ptr.vmem [resolvable:$true] %s236_s15 }
  0x10   :  { %v149_v15 = vsel %vm132_vm0, %v303_v14, 0  ;;  %v305_v17 = vld [vmem:[%s435_s1 + $0x28] sm:$0xff]   ;;  %v307_v20 = vld [vmem:[%s435_s1 + $0x30] sm:$0xff]   ;;  %v308_v22 = vld [vmem:[%s435_s1 + $0x78] sm:$0xff]   ;;  %s311_s16 = scalar_lea.vmem %s237_s15, 512  ;;  %p316_p1 = scmp.lt.s32.totalorder %s237_s15, %s237_s15 }
  0x11   :  { %v152_v18 = vsel %vm132_vm0, %v305_v17, 0  ;;  %v155_v21 = vsel %vm132_vm0, %v307_v20, 0  ;;  %v309_v23 = vld [vmem:[%s435_s1 + $0x38] sm:$0xff]   ;;  %p312_p0 = scmp.ne.s32.totalorder %s237_s15, %s311_s16  ;;  %p317_p2 = scmp.lt.s32.totalorder %s311_s16, %s311_s16 }
  0x12   :  { %v158_v24 = vsel %vm132_vm0, %v309_v23, 0 }
  0x13   :  { %p318_p3 = por %p317_p2, %p316_p1 }
  0x14   :  { %270 = vmatpush3.bf16.xpose.msra.mxu0 %v143_v9 }
  0x15   :  { %286 = vmatprep.subr.msk.bf16.mxu0 %vm132_vm0, %v300_v10  ;;  %p319_p4 = pnand %p318_p3, %p312_p0 }
  0x1c   :  { %272 = vmatpush3.bf16.xpose.msra.mxu0 %v146_v12 }
  0x1d   :  { %287 = vmatprep.subr.msk.bf16.mxu0 %vm132_vm0, %v302_v13 }
  0x24   :  { %274 = vmatpush3.bf16.xpose.msra.mxu0 %v149_v15 }
  0x25   :  { %288 = vmatprep.subr.msk.bf16.mxu0 %vm132_vm0, %v304_v16 }
  0x2c   :  { %276 = vmatpush3.bf16.xpose.msra.mxu0 %v152_v18 }
  0x2d   :  { %289 = vmatprep.subr.msk.bf16.mxu0 %vm132_vm0, %v306_v19 }
  0x34   :  { %278 = vmatpush3.bf16.xpose.msra.mxu0 %v155_v21 }
  0x35   :  { %290 = vmatprep.subr.msk.bf16.mxu0 %vm132_vm0, %v308_v22 }
  0x3c   :  { %280 = vmatpush3.bf16.xpose.msra.mxu0 %v158_v24 }
  0x43   :  { %282 = vmatmul.mubr.msk.bf16.vlgmr.msra.gmra.mrb[0].mxu0 %vm132_vm0, %v310_v8 }
 0x116   :  { %v218_v25 = vpop.f32.mrb[0].mxu0 }
 0x117   :  { %227 = vst [vmem:[#allocation2] sm:$0xff] %v218_v25  ;;  %v220_v26 = vpop.f32.mrb[1].mxu0 }
 0x118   :  { %228 = vst [vmem:[#allocation2 + $0x8] sm:$0xff] %v220_v26  ;;  %v222_v27 = vpop.f32.mrb[2].mxu0 }
 0x119   :  { %229 = vst [vmem:[#allocation2 + $0x10] sm:$0xff] %v222_v27  ;;  %v224_v28 = vpop.f32.mrb[3].mxu0 }
 0x11a   :  { %230 = vst [vmem:[#allocation2 + $0x18] sm:$0xff] %v224_v28 }
 0x11b   :  { %322 = shalt.err (!%p319_p4)
}
 0x11c   :  { %s323_s18 = scalar_lea.hbm %s436_s2, 512 }
 0x11d   :  { %p324_p5 = scmp.ne.s32.totalorder %s436_s2, %s323_s18  ;;  %p327_p6 = scmp.lt.u32.totalorder %s323_s18, %s436_s2 }
 0x11f   :  { %p329_p7 = pnand %p327_p6, %p324_p5 }
 0x121   :  { %332 = shalt.err (!%p329_p7)
}
 0x122   :  { %s336_s23 = smov 256   ;;  %s337_s24 = smov 16  }
 0x123   :  { %242 = dma.vmem_to_hbm [thread:$0]  %s237_s15, 512, %s436_s2, [#allocation3], %s336_s23, %s336_s23, %s337_s24  }
 0x124   :  { %333 = dma.done.wait [#allocation3], 512  }
 0x125   :  { %334 = vsyncadd [#allocation3], 4294966784 }
 0x126   :  { %246 = vsyncpa [#allocation3], 1 }

</bundles_post_ra>
